<compile_context>
chip_gen: v5e
topology: v5e:2x2
jax: 0.10.0
libtpu: 0.0.40
codegen_flags: <defaults>
</compile_context>

<pallas_src>
import jax
import jax.numpy as jnp
from jax import lax
from jax.experimental import pallas as pl
from jax.experimental.pallas import tpu as pltpu

K = 7            # kernel_size
PAD = K // 2     # padding = kernel_size // 2


def _round_up(n, m):
    return ((n + m - 1) // m) * m


def _spatial_attention_kernel(x_ref, band_ref, o_ref, feat_ref):
    # x_ref:    VMEM (1, 1, C, Th+2*PAD, Wp)  input H-tile incl. halo, original dtype
    # band_ref: VMEM (2*K, Wp, Wo)            banded Toeplitz conv matrices (bf16/f32)
    # o_ref:    VMEM (1, 1, Th, Wo)           lane-dense output tile (input dtype)
    # feat_ref: VMEM (2, Th+2*PAD, Wp) f32    scratch: padded avg / max feature maps
    C = x_ref.shape[2]
    Th = o_ref.shape[2]
    Wo = o_ref.shape[3]

    # --- fused single-pass channel reduction: running sum + running max -----
    # Input stays in its HBM dtype; cast per channel here (review: no pre-cast).
    x0 = x_ref[0, 0, 0].astype(jnp.float32)

    def red_body(ci, carry):
        s, m = carry
        xc = x_ref[0, 0, ci].astype(jnp.float32)
        return s + xc, jnp.maximum(m, xc)

    # Unrolled so the LLO scheduler can co-issue the channel loads with the
    # add/max VALU ops (this loop touches every input byte).
    s, m = lax.fori_loop(1, C, red_body, (x0, x0), unroll=True)

    # Zero-padded border of x gives avg = 0, max = 0 there, which is exactly
    # the zero padding the 7x7 conv needs -> no concatenates / relayouts.
    feat_ref[0] = s * (1.0 / C)                        # avg map
    feat_ref[1] = m                                    # max map

    # --- 7x7 conv as 14 banded matmuls on the MXU (f32 accumulate) ----------
    # out[i, j] = sum_{c,di} feat_c[i+di, :] @ band[c*K + di]
    acc = jnp.zeros((Th, Wo), jnp.float32)
    cdt = band_ref.dtype
    for c in range(2):                                 # 2 feature channels
        for di in range(K):                            # 7 kernel rows
            rows = feat_ref[c, di:di + Th, :].astype(cdt)   # (Th, Wp)
            acc = acc + jnp.dot(rows, band_ref[c * K + di],
                                preferred_element_type=jnp.float32)

    o_ref[0, 0] = jax.nn.sigmoid(acc).astype(o_ref.dtype)   # EUP sigmoid


def _build_band(weight, W, Wp, Wo):
    """Banded Toeplitz matrices: band[c*K+di, j+dj, j] = weight[0, c, di, dj]."""
    w = weight.reshape(2, K, K).astype(jnp.float32)    # (2, K, K)
    p = jnp.arange(Wp)[:, None]                        # padded-width index
    j = jnp.arange(Wo)[None, :]                        # output-column index
    dj = p - j                                         # (Wp, Wo)
    valid = (dj >= 0) & (dj < K) & (j < W)
    dj_c = jnp.clip(dj, 0, K - 1)
    band = w[:, :, dj_c] * valid[None, None].astype(jnp.float32)  # (2,K,Wp,Wo)
    return band.reshape(2 * K, Wp, Wo)


def make_spatial_attention(weight, *, tile_h=128, band_dtype=jnp.bfloat16):
    """Factory: precompute/cache the Toeplitz band once per (weight, shape).

    weight: (1, 2, K, K) OIHW conv weight of nn.Conv2d(2, 1, 7, bias=False).
    Returns forward(x) with x: (B, C, H, W) -> (B, 1, H, W) in x.dtype.
    """
    weight = jnp.asarray(weight)
    band_cache = {}

    def forward(x):
        B, C, H, W = x.shape
        th = max(1, min(tile_h, H))
        nH = pl.cdiv(H, th)
        Hp = nH * th                       # padded output height (tile multiple)
        Th_in = th + 2 * PAD               # per-tile input rows (incl. halo)
        Wp = _round_up(W + 2 * PAD, 128)   # lane-dense padded input width
        Wo = _round_up(W, 128)             # lane-dense output width

        key = (H, W, th)
        band = band_cache.get(key)
        if band is None:                   # built once per weight/shape (cached)
            band = _build_band(weight, W, Wp, Wo).astype(band_dtype)
            band_cache[key] = band

        # Wrapper-side layout plumbing, in the ORIGINAL dtype:
        #   conv zero pad + bottom pad to a whole number of H tiles + lane pad,
        #   then stack overlapping H tiles (2*PAD-row halo) so every grid step
        #   is self-contained -> plain Blocked specs, both axes "parallel".
        xp = jnp.pad(x, ((0, 0), (0, 0),
                         (PAD, Hp - H + PAD), (PAD, Wp - W - PAD)))
        x_tiles = jnp.stack(
            [lax.slice_in_dim(xp, h * th, h * th + Th_in, axis=2)
             for h in range(nH)], axis=1)              # (B, nH, C, Th_in, Wp)

        out_dtype = x.dtype

        # Explicit VMEM budget (review): 2x double-buffered in/out/band blocks
        # + f32 feat scratch + headroom; re-derived from the actual tile sizes.
        x_blk = C * Th_in * Wp * x.dtype.itemsize
        o_blk = th * Wo * jnp.dtype(out_dtype).itemsize
        band_b = band.size * band.dtype.itemsize
        feat_b = 2 * Th_in * Wp * 4
        need = 2 * (x_blk + o_blk + band_b) + feat_b
        vmem_limit = int(min(max(need + (8 << 20), 16 << 20), 128 << 20))

        grid_spec = pltpu.PrefetchScalarGridSpec(
            num_scalar_prefetch=0,
            grid=(B, nH),
            in_specs=[
                pl.BlockSpec((1, 1, C, Th_in, Wp),
                             lambda b, h: (b, h, 0, 0, 0)),
                # Same block every step -> stays resident in VMEM.
                pl.BlockSpec((2 * K, Wp, Wo), lambda b, h: (0, 0, 0)),
            ],
            out_specs=pl.BlockSpec((1, 1, th, Wo), lambda b, h: (b, h, 0, 0)),
            scratch_shapes=[pltpu.VMEM((2, Th_in, Wp), jnp.float32)],
        )
        out = pl.pallas_call(
            _spatial_attention_kernel,
            out_shape=jax.ShapeDtypeStruct((B, nH, th, Wo), out_dtype),
            grid_spec=grid_spec,
            compiler_params=pltpu.CompilerParams(
                dimension_semantics=("parallel", "parallel"),
                vmem_limit_bytes=vmem_limit),
        )(x_tiles, band)

        # (B, nH, th, Wo) -> (B, 1, Hp, Wo), then trim tile/lane padding.
        return out.reshape(B, 1, Hp, Wo)[:, :, :H, :W]

    return forward


def spatial_attention_ref(x, weight):
    """Pure-JAX reference matching the PyTorch forward."""
    avg = jnp.mean(x, axis=1, keepdims=True)
    mx = jnp.max(x, axis=1, keepdims=True)
    out = jnp.concatenate([avg, mx], axis=1)
    out = jax.lax.conv_general_dilated(
        out, weight, window_strides=(1, 1),
        padding=[(PAD, PAD), (PAD, PAD)],
        dimension_numbers=("NCHW", "OIHW", "NCHW"),
        precision=jax.lax.Precision.HIGHEST)
    return jax.nn.sigmoid(out)


if __name__ == "__main__":
    key = jax.random.PRNGKey(0)
    kx, kw = jax.random.split(key)

    B, C, H, W = 2, 4, 16, 16
    x = jax.random.normal(kx, (B, C, H, W), dtype=jnp.float32)
    # nn.Conv2d(2, 1, 7, bias=False) weight (OIHW).
    weight = jax.random.normal(kw, (1, 2, K, K), dtype=jnp.float32) * 0.1

    ref = spatial_attention_ref(x, weight)

    # tile_h=8 -> two H tiles at H=16: exercises the halo-tiling path.
    # (1) f32 band: structural / halo correctness at the previously-validated
    #     tolerance (MXU f32-path rounding on the 98-tap sums).
    fwd_f32 = make_spatial_attention(weight, tile_h=8, band_dtype=jnp.float32)
    out = jax.block_until_ready(fwd_f32(x))
    assert out.shape == (B, 1, H, W)
    assert jnp.allclose(out, ref, atol=1e-3, rtol=1e-3), "f32-band mismatch"

    # (2) bf16 band (production path per review): bf16 MXU inputs, f32
    #     accumulate -> up to ~1e-2 absolute on the 98-tap sums.
    fwd_bf16 = make_spatial_attention(weight, tile_h=8, band_dtype=jnp.bfloat16)
    out_bf16 = jax.block_until_ready(fwd_bf16(x))
    assert out_bf16.shape == (B, 1, H, W)
    assert jnp.allclose(out_bf16, ref, atol=1e-2, rtol=1e-2), "bf16-band mismatch"

    print("KERNEL_OK")
</pallas_src>

<mosaic_0001>
module attributes {stable_mosaic.version = 11 : i64} {
  func.func @_spatial_attention_kernel(%arg0: i32, %arg1: i32, %arg2: memref<1x1x4x14x128xf32, #tpu.memory_space<vmem>>, %arg3: memref<14x128x128xf32, #tpu.memory_space<vmem>>, %arg4: memref<1x1x8x128xf32, #tpu.memory_space<vmem>>, %arg5: memref<2x14x128xf32, #tpu.memory_space<vmem>>) attributes {dimension_semantics = [#tpu.dimension_semantics<parallel>, #tpu.dimension_semantics<parallel>], iteration_bounds = array<i64: 2, 2>, scalar_prefetch = 0 : i64, scratch_operands = 1 : i64, tpu.core_type = #tpu.core_type<tc>, window_params = [{transform_indices = @transform_0, window_bounds = array<i64: 1, 1, 4, 14, 128>}, {pipeline_mode = #tpu.pipeline_mode<synchronous>, transform_indices = @transform_1, window_bounds = array<i64: 14, 128, 128>}, {transform_indices = @transform_2, window_bounds = array<i64: 1, 1, 8, 128>}]} {
    %c0 = arith.constant 0 : index
    %c0_0 = arith.constant 0 : index
    %c0_1 = arith.constant 0 : index
    %c0_2 = arith.constant 0 : index
    %c0_3 = arith.constant 0 : index
    %0 = vector.load %arg2[%c0, %c0_0, %c0_1, %c0_2, %c0_3] : memref<1x1x4x14x128xf32, #tpu.memory_space<vmem>>, vector<1x1x1x14x128xf32>
    %1 = vector.shape_cast %0 : vector<1x1x1x14x128xf32> to vector<14x128xf32>
    %c1_i32 = arith.constant 1 : i32
    %c0_4 = arith.constant 0 : index
    %c0_5 = arith.constant 0 : index
    %2 = arith.index_cast %c1_i32 : i32 to index
    %c0_6 = arith.constant 0 : index
    %c0_7 = arith.constant 0 : index
    %3 = vector.load %arg2[%c0_4, %c0_5, %2, %c0_6, %c0_7] : memref<1x1x4x14x128xf32, #tpu.memory_space<vmem>>, vector<1x1x1x14x128xf32>
    %4 = vector.shape_cast %3 : vector<1x1x1x14x128xf32> to vector<14x128xf32>
    %5 = arith.addf %1, %4 : vector<14x128xf32>
    %6 = arith.maximumf %1, %4 : vector<14x128xf32>
    %c2_i32 = arith.constant 2 : i32
    %c0_8 = arith.constant 0 : index
    %c0_9 = arith.constant 0 : index
    %7 = arith.index_cast %c2_i32 : i32 to index
    %c0_10 = arith.constant 0 : index
    %c0_11 = arith.constant 0 : index
    %8 = vector.load %arg2[%c0_8, %c0_9, %7, %c0_10, %c0_11] : memref<1x1x4x14x128xf32, #tpu.memory_space<vmem>>, vector<1x1x1x14x128xf32>
    %9 = vector.shape_cast %8 : vector<1x1x1x14x128xf32> to vector<14x128xf32>
    %10 = arith.addf %5, %9 : vector<14x128xf32>
    %11 = arith.maximumf %6, %9 : vector<14x128xf32>
    %c3_i32 = arith.constant 3 : i32
    %c0_12 = arith.constant 0 : index
    %c0_13 = arith.constant 0 : index
    %12 = arith.index_cast %c3_i32 : i32 to index
    %c0_14 = arith.constant 0 : index
    %c0_15 = arith.constant 0 : index
    %13 = vector.load %arg2[%c0_12, %c0_13, %12, %c0_14, %c0_15] : memref<1x1x4x14x128xf32, #tpu.memory_space<vmem>>, vector<1x1x1x14x128xf32>
    %14 = vector.shape_cast %13 : vector<1x1x1x14x128xf32> to vector<14x128xf32>
    %15 = arith.addf %10, %14 : vector<14x128xf32>
    %16 = arith.maximumf %11, %14 : vector<14x128xf32>
    %c3_i32_16 = arith.constant 3 : i32
    %cst = arith.constant 2.500000e-01 : f32
    %17 = vector.broadcast %cst : f32 to vector<14x128xf32>
    %18 = arith.mulf %15, %17 : vector<14x128xf32>
    %c0_17 = arith.constant 0 : index
    %c0_18 = arith.constant 0 : index
    %c0_19 = arith.constant 0 : index
    %19 = vector.load %arg5[%c0_17, %c0_18, %c0_19] : memref<2x14x128xf32, #tpu.memory_space<vmem>>, vector<1x14x128xf32>
    %20 = vector.shape_cast %19 : vector<1x14x128xf32> to vector<14x128xf32>
    %21 = vector.shape_cast %18 : vector<14x128xf32> to vector<1x14x128xf32>
    tpu.vector_store %arg5[%c0_17, %c0_18, %c0_19], %21 {strides = array<i32>} : memref<2x14x128xf32, #tpu.memory_space<vmem>>, vector<1x14x128xf32>,
    %c1 = arith.constant 1 : index
    %c0_20 = arith.constant 0 : index
    %c0_21 = arith.constant 0 : index
    %22 = vector.load %arg5[%c1, %c0_20, %c0_21] : memref<2x14x128xf32, #tpu.memory_space<vmem>>, vector<1x14x128xf32>
    %23 = vector.shape_cast %22 : vector<1x14x128xf32> to vector<14x128xf32>
    %24 = vector.shape_cast %16 : vector<14x128xf32> to vector<1x14x128xf32>
    tpu.vector_store %arg5[%c1, %c0_20, %c0_21], %24 {strides = array<i32>} : memref<2x14x128xf32, #tpu.memory_space<vmem>>, vector<1x14x128xf32>,
    %cst_22 = arith.constant 0.000000e+00 : f32
    %25 = vector.broadcast %cst_22 : f32 to vector<8x128xf32>
    %c0_23 = arith.constant 0 : index
    %c0_24 = arith.constant 0 : index
    %c0_25 = arith.constant 0 : index
    %26 = vector.load %arg5[%c0_23, %c0_24, %c0_25] : memref<2x14x128xf32, #tpu.memory_space<vmem>>, vector<1x8x128xf32>
    %27 = vector.shape_cast %26 : vector<1x8x128xf32> to vector<8x128xf32>
    %c0_26 = arith.constant 0 : index
    %c0_27 = arith.constant 0 : index
    %c0_28 = arith.constant 0 : index
    %28 = vector.load %arg3[%c0_26, %c0_27, %c0_28] : memref<14x128x128xf32, #tpu.memory_space<vmem>>, vector<1x128x128xf32>
    %29 = vector.shape_cast %28 : vector<1x128x128xf32> to vector<128x128xf32>
    %cst_29 = arith.constant dense<0.000000e+00> : vector<8x128xf32>
    %30 = tpu.matmul %27, %29, %cst_29 {dimension_numbers = #tpu.dot_dimension_numbers<[1], [0], [0], [1], [0, 0, 1, 1], [], []>} : vector<8x128xf32>, vector<128x128xf32>, vector<8x128xf32> -> vector<8x128xf32>
    %31 = arith.addf %25, %30 : vector<8x128xf32>
    %c0_30 = arith.constant 0 : index
    %c1_31 = arith.constant 1 : index
    %c0_32 = arith.constant 0 : index
    %32 = vector.load %arg5[%c0_30, %c1_31, %c0_32] : memref<2x14x128xf32, #tpu.memory_space<vmem>>, vector<1x8x128xf32>
    %33 = vector.shape_cast %32 : vector<1x8x128xf32> to vector<8x128xf32>
    %c1_33 = arith.constant 1 : index
    %c0_34 = arith.constant 0 : index
    %c0_35 = arith.constant 0 : index
    %34 = vector.load %arg3[%c1_33, %c0_34, %c0_35] : memref<14x128x128xf32, #tpu.memory_space<vmem>>, vector<1x128x128xf32>
    %35 = vector.shape_cast %34 : vector<1x128x128xf32> to vector<128x128xf32>
    %cst_36 = arith.constant dense<0.000000e+00> : vector<8x128xf32>
    %36 = tpu.matmul %33, %35, %cst_36 {dimension_numbers = #tpu.dot_dimension_numbers<[1], [0], [0], [1], [0, 0, 1, 1], [], []>} : vector<8x128xf32>, vector<128x128xf32>, vector<8x128xf32> -> vector<8x128xf32>
    %37 = arith.addf %31, %36 : vector<8x128xf32>
    %c0_37 = arith.constant 0 : index
    %c2 = arith.constant 2 : index
    %c0_38 = arith.constant 0 : index
    %38 = vector.load %arg5[%c0_37, %c2, %c0_38] : memref<2x14x128xf32, #tpu.memory_space<vmem>>, vector<1x8x128xf32>
    %39 = vector.shape_cast %38 : vector<1x8x128xf32> to vector<8x128xf32>
    %c2_39 = arith.constant 2 : index
    %c0_40 = arith.constant 0 : index
    %c0_41 = arith.constant 0 : index
    %40 = vector.load %arg3[%c2_39, %c0_40, %c0_41] : memref<14x128x128xf32, #tpu.memory_space<vmem>>, vector<1x128x128xf32>
    %41 = vector.shape_cast %40 : vector<1x128x128xf32> to vector<128x128xf32>
    %cst_42 = arith.constant dense<0.000000e+00> : vector<8x128xf32>
    %42 = tpu.matmul %39, %41, %cst_42 {dimension_numbers = #tpu.dot_dimension_numbers<[1], [0], [0], [1], [0, 0, 1, 1], [], []>} : vector<8x128xf32>, vector<128x128xf32>, vector<8x128xf32> -> vector<8x128xf32>
    %43 = arith.addf %37, %42 : vector<8x128xf32>
    %c0_43 = arith.constant 0 : index
    %c3 = arith.constant 3 : index
    %c0_44 = arith.constant 0 : index
    %44 = vector.load %arg5[%c0_43, %c3, %c0_44] : memref<2x14x128xf32, #tpu.memory_space<vmem>>, vector<1x8x128xf32>
    %45 = vector.shape_cast %44 : vector<1x8x128xf32> to vector<8x128xf32>
    %c3_45 = arith.constant 3 : index
    %c0_46 = arith.constant 0 : index
    %c0_47 = arith.constant 0 : index
    %46 = vector.load %arg3[%c3_45, %c0_46, %c0_47] : memref<14x128x128xf32, #tpu.memory_space<vmem>>, vector<1x128x128xf32>
    %47 = vector.shape_cast %46 : vector<1x128x128xf32> to vector<128x128xf32>
    %cst_48 = arith.constant dense<0.000000e+00> : vector<8x128xf32>
    %48 = tpu.matmul %45, %47, %cst_48 {dimension_numbers = #tpu.dot_dimension_numbers<[1], [0], [0], [1], [0, 0, 1, 1], [], []>} : vector<8x128xf32>, vector<128x128xf32>, vector<8x128xf32> -> vector<8x128xf32>
    %49 = arith.addf %43, %48 : vector<8x128xf32>
    %c0_49 = arith.constant 0 : index
    %c4 = arith.constant 4 : index
    %c0_50 = arith.constant 0 : index
    %50 = vector.load %arg5[%c0_49, %c4, %c0_50] : memref<2x14x128xf32, #tpu.memory_space<vmem>>, vector<1x8x128xf32>
    %51 = vector.shape_cast %50 : vector<1x8x128xf32> to vector<8x128xf32>
    %c4_51 = arith.constant 4 : index
    %c0_52 = arith.constant 0 : index
    %c0_53 = arith.constant 0 : index
    %52 = vector.load %arg3[%c4_51, %c0_52, %c0_53] : memref<14x128x128xf32, #tpu.memory_space<vmem>>, vector<1x128x128xf32>
    %53 = vector.shape_cast %52 : vector<1x128x128xf32> to vector<128x128xf32>
    %cst_54 = arith.constant dense<0.000000e+00> : vector<8x128xf32>
    %54 = tpu.matmul %51, %53, %cst_54 {dimension_numbers = #tpu.dot_dimension_numbers<[1], [0], [0], [1], [0, 0, 1, 1], [], []>} : vector<8x128xf32>, vector<128x128xf32>, vector<8x128xf32> -> vector<8x128xf32>
    %55 = arith.addf %49, %54 : vector<8x128xf32>
    %c0_55 = arith.constant 0 : index
    %c5 = arith.constant 5 : index
    %c0_56 = arith.constant 0 : index
    %56 = vector.load %arg5[%c0_55, %c5, %c0_56] : memref<2x14x128xf32, #tpu.memory_space<vmem>>, vector<1x8x128xf32>
    %57 = vector.shape_cast %56 : vector<1x8x128xf32> to vector<8x128xf32>
    %c5_57 = arith.constant 5 : index
    %c0_58 = arith.constant 0 : index
    %c0_59 = arith.constant 0 : index
    %58 = vector.load %arg3[%c5_57, %c0_58, %c0_59] : memref<14x128x128xf32, #tpu.memory_space<vmem>>, vector<1x128x128xf32>
    %59 = vector.shape_cast %58 : vector<1x128x128xf32> to vector<128x128xf32>
    %cst_60 = arith.constant dense<0.000000e+00> : vector<8x128xf32>
    %60 = tpu.matmul %57, %59, %cst_60 {dimension_numbers = #tpu.dot_dimension_numbers<[1], [0], [0], [1], [0, 0, 1, 1], [], []>} : vector<8x128xf32>, vector<128x128xf32>, vector<8x128xf32> -> vector<8x128xf32>
    %61 = arith.addf %55, %60 : vector<8x128xf32>
    %c0_61 = arith.constant 0 : index
    %c6 = arith.constant 6 : index
    %c0_62 = arith.constant 0 : index
    %62 = vector.load %arg5[%c0_61, %c6, %c0_62] : memref<2x14x128xf32, #tpu.memory_space<vmem>>, vector<1x8x128xf32>
    %63 = vector.shape_cast %62 : vector<1x8x128xf32> to vector<8x128xf32>
    %c6_63 = arith.constant 6 : index
    %c0_64 = arith.constant 0 : index
    %c0_65 = arith.constant 0 : index
    %64 = vector.load %arg3[%c6_63, %c0_64, %c0_65] : memref<14x128x128xf32, #tpu.memory_space<vmem>>, vector<1x128x128xf32>
    %65 = vector.shape_cast %64 : vector<1x128x128xf32> to vector<128x128xf32>
    %cst_66 = arith.constant dense<0.000000e+00> : vector<8x128xf32>
    %66 = tpu.matmul %63, %65, %cst_66 {dimension_numbers = #tpu.dot_dimension_numbers<[1], [0], [0], [1], [0, 0, 1, 1], [], []>} : vector<8x128xf32>, vector<128x128xf32>, vector<8x128xf32> -> vector<8x128xf32>
    %67 = arith.addf %61, %66 : vector<8x128xf32>
    %c1_67 = arith.constant 1 : index
    %c0_68 = arith.constant 0 : index
    %c0_69 = arith.constant 0 : index
    %68 = vector.load %arg5[%c1_67, %c0_68, %c0_69] : memref<2x14x128xf32, #tpu.memory_space<vmem>>, vector<1x8x128xf32>
    %69 = vector.shape_cast %68 : vector<1x8x128xf32> to vector<8x128xf32>
    %c7 = arith.constant 7 : index
    %c0_70 = arith.constant 0 : index
    %c0_71 = arith.constant 0 : index
    %70 = vector.load %arg3[%c7, %c0_70, %c0_71] : memref<14x128x128xf32, #tpu.memory_space<vmem>>, vector<1x128x128xf32>
    %71 = vector.shape_cast %70 : vector<1x128x128xf32> to vector<128x128xf32>
    %cst_72 = arith.constant dense<0.000000e+00> : vector<8x128xf32>
    %72 = tpu.matmul %69, %71, %cst_72 {dimension_numbers = #tpu.dot_dimension_numbers<[1], [0], [0], [1], [0, 0, 1, 1], [], []>} : vector<8x128xf32>, vector<128x128xf32>, vector<8x128xf32> -> vector<8x128xf32>
    %73 = arith.addf %67, %72 : vector<8x128xf32>
    %c1_73 = arith.constant 1 : index
    %c1_74 = arith.constant 1 : index
    %c0_75 = arith.constant 0 : index
    %74 = vector.load %arg5[%c1_73, %c1_74, %c0_75] : memref<2x14x128xf32, #tpu.memory_space<vmem>>, vector<1x8x128xf32>
    %75 = vector.shape_cast %74 : vector<1x8x128xf32> to vector<8x128xf32>
    %c8 = arith.constant 8 : index
    %c0_76 = arith.constant 0 : index
    %c0_77 = arith.constant 0 : index
    %76 = vector.load %arg3[%c8, %c0_76, %c0_77] : memref<14x128x128xf32, #tpu.memory_space<vmem>>, vector<1x128x128xf32>
    %77 = vector.shape_cast %76 : vector<1x128x128xf32> to vector<128x128xf32>
    %cst_78 = arith.constant dense<0.000000e+00> : vector<8x128xf32>
    %78 = tpu.matmul %75, %77, %cst_78 {dimension_numbers = #tpu.dot_dimension_numbers<[1], [0], [0], [1], [0, 0, 1, 1], [], []>} : vector<8x128xf32>, vector<128x128xf32>, vector<8x128xf32> -> vector<8x128xf32>
    %79 = arith.addf %73, %78 : vector<8x128xf32>
    %c1_79 = arith.constant 1 : index
    %c2_80 = arith.constant 2 : index
    %c0_81 = arith.constant 0 : index
    %80 = vector.load %arg5[%c1_79, %c2_80, %c0_81] : memref<2x14x128xf32, #tpu.memory_space<vmem>>, vector<1x8x128xf32>
    %81 = vector.shape_cast %80 : vector<1x8x128xf32> to vector<8x128xf32>
    %c9 = arith.constant 9 : index
    %c0_82 = arith.constant 0 : index
    %c0_83 = arith.constant 0 : index
    %82 = vector.load %arg3[%c9, %c0_82, %c0_83] : memref<14x128x128xf32, #tpu.memory_space<vmem>>, vector<1x128x128xf32>
    %83 = vector.shape_cast %82 : vector<1x128x128xf32> to vector<128x128xf32>
    %cst_84 = arith.constant dense<0.000000e+00> : vector<8x128xf32>
    %84 = tpu.matmul %81, %83, %cst_84 {dimension_numbers = #tpu.dot_dimension_numbers<[1], [0], [0], [1], [0, 0, 1, 1], [], []>} : vector<8x128xf32>, vector<128x128xf32>, vector<8x128xf32> -> vector<8x128xf32>
    %85 = arith.addf %79, %84 : vector<8x128xf32>
    %c1_85 = arith.constant 1 : index
    %c3_86 = arith.constant 3 : index
    %c0_87 = arith.constant 0 : index
    %86 = vector.load %arg5[%c1_85, %c3_86, %c0_87] : memref<2x14x128xf32, #tpu.memory_space<vmem>>, vector<1x8x128xf32>
    %87 = vector.shape_cast %86 : vector<1x8x128xf32> to vector<8x128xf32>
    %c10 = arith.constant 10 : index
    %c0_88 = arith.constant 0 : index
    %c0_89 = arith.constant 0 : index
    %88 = vector.load %arg3[%c10, %c0_88, %c0_89] : memref<14x128x128xf32, #tpu.memory_space<vmem>>, vector<1x128x128xf32>
    %89 = vector.shape_cast %88 : vector<1x128x128xf32> to vector<128x128xf32>
    %cst_90 = arith.constant dense<0.000000e+00> : vector<8x128xf32>
    %90 = tpu.matmul %87, %89, %cst_90 {dimension_numbers = #tpu.dot_dimension_numbers<[1], [0], [0], [1], [0, 0, 1, 1], [], []>} : vector<8x128xf32>, vector<128x128xf32>, vector<8x128xf32> -> vector<8x128xf32>
    %91 = arith.addf %85, %90 : vector<8x128xf32>
    %c1_91 = arith.constant 1 : index
    %c4_92 = arith.constant 4 : index
    %c0_93 = arith.constant 0 : index
    %92 = vector.load %arg5[%c1_91, %c4_92, %c0_93] : memref<2x14x128xf32, #tpu.memory_space<vmem>>, vector<1x8x128xf32>
    %93 = vector.shape_cast %92 : vector<1x8x128xf32> to vector<8x128xf32>
    %c11 = arith.constant 11 : index
    %c0_94 = arith.constant 0 : index
    %c0_95 = arith.constant 0 : index
    %94 = vector.load %arg3[%c11, %c0_94, %c0_95] : memref<14x128x128xf32, #tpu.memory_space<vmem>>, vector<1x128x128xf32>
    %95 = vector.shape_cast %94 : vector<1x128x128xf32> to vector<128x128xf32>
    %cst_96 = arith.constant dense<0.000000e+00> : vector<8x128xf32>
    %96 = tpu.matmul %93, %95, %cst_96 {dimension_numbers = #tpu.dot_dimension_numbers<[1], [0], [0], [1], [0, 0, 1, 1], [], []>} : vector<8x128xf32>, vector<128x128xf32>, vector<8x128xf32> -> vector<8x128xf32>
    %97 = arith.addf %91, %96 : vector<8x128xf32>
    %c1_97 = arith.constant 1 : index
    %c5_98 = arith.constant 5 : index
    %c0_99 = arith.constant 0 : index
    %98 = vector.load %arg5[%c1_97, %c5_98, %c0_99] : memref<2x14x128xf32, #tpu.memory_space<vmem>>, vector<1x8x128xf32>
    %99 = vector.shape_cast %98 : vector<1x8x128xf32> to vector<8x128xf32>
    %c12 = arith.constant 12 : index
    %c0_100 = arith.constant 0 : index
    %c0_101 = arith.constant 0 : index
    %100 = vector.load %arg3[%c12, %c0_100, %c0_101] : memref<14x128x128xf32, #tpu.memory_space<vmem>>, vector<1x128x128xf32>
    %101 = vector.shape_cast %100 : vector<1x128x128xf32> to vector<128x128xf32>
    %cst_102 = arith.constant dense<0.000000e+00> : vector<8x128xf32>
    %102 = tpu.matmul %99, %101, %cst_102 {dimension_numbers = #tpu.dot_dimension_numbers<[1], [0], [0], [1], [0, 0, 1, 1], [], []>} : vector<8x128xf32>, vector<128x128xf32>, vector<8x128xf32> -> vector<8x128xf32>
    %103 = arith.addf %97, %102 : vector<8x128xf32>
    %c1_103 = arith.constant 1 : index
    %c6_104 = arith.constant 6 : index
    %c0_105 = arith.constant 0 : index
    %104 = vector.load %arg5[%c1_103, %c6_104, %c0_105] : memref<2x14x128xf32, #tpu.memory_space<vmem>>, vector<1x8x128xf32>
    %105 = vector.shape_cast %104 : vector<1x8x128xf32> to vector<8x128xf32>
    %c13 = arith.constant 13 : index
    %c0_106 = arith.constant 0 : index
    %c0_107 = arith.constant 0 : index
    %106 = vector.load %arg3[%c13, %c0_106, %c0_107] : memref<14x128x128xf32, #tpu.memory_space<vmem>>, vector<1x128x128xf32>
    %107 = vector.shape_cast %106 : vector<1x128x128xf32> to vector<128x128xf32>
    %cst_108 = arith.constant dense<0.000000e+00> : vector<8x128xf32>
    %108 = tpu.matmul %105, %107, %cst_108 {dimension_numbers = #tpu.dot_dimension_numbers<[1], [0], [0], [1], [0, 0, 1, 1], [], []>} : vector<8x128xf32>, vector<128x128xf32>, vector<8x128xf32> -> vector<8x128xf32>
    %109 = arith.addf %103, %108 : vector<8x128xf32>
    %110 = arith.negf %109 : vector<8x128xf32>
    %111 = math.exp %110 : vector<8x128xf32>
    %cst_109 = arith.constant 1.000000e+00 : f32
    %112 = vector.broadcast %cst_109 : f32 to vector<8x128xf32>
    %113 = arith.addf %112, %111 : vector<8x128xf32>
    %114 = arith.divf %112, %113 : vector<8x128xf32>
    %c0_110 = arith.constant 0 : index
    %c0_111 = arith.constant 0 : index
    %c0_112 = arith.constant 0 : index
    %c0_113 = arith.constant 0 : index
    %115 = vector.load %arg4[%c0_110, %c0_111, %c0_112, %c0_113] : memref<1x1x8x128xf32, #tpu.memory_space<vmem>>, vector<1x1x8x128xf32>
    %116 = vector.shape_cast %115 : vector<1x1x8x128xf32> to vector<8x128xf32>
    %117 = vector.shape_cast %114 : vector<8x128xf32> to vector<1x1x8x128xf32>
    tpu.vector_store %arg4[%c0_110, %c0_111, %c0_112, %c0_113], %117 {strides = array<i32>} : memref<1x1x8x128xf32, #tpu.memory_space<vmem>>, vector<1x1x8x128xf32>,
    return
  }
  func.func @transform_0(%arg0: i32, %arg1: i32) -> (i32, i32, i32, i32, i32) {
    %c0_i32 = arith.constant 0 : i32
    %c0_i32_0 = arith.constant 0 : i32
    %c0_i32_1 = arith.constant 0 : i32
    %c0_i32_2 = arith.constant 0 : i32
    return %arg0, %arg1, %c0_i32, %c0_i32_0, %c0_i32_1 : i32, i32, i32, i32, i32
  }
  func.func @transform_1(%arg0: i32, %arg1: i32) -> (i32, i32, i32) {
    %c0_i32 = arith.constant 0 : i32
    %c0_i32_0 = arith.constant 0 : i32
    %c0_i32_1 = arith.constant 0 : i32
    %c0_i32_2 = arith.constant 0 : i32
    return %c0_i32, %c0_i32_0, %c0_i32_1 : i32, i32, i32
  }
  func.func @transform_2(%arg0: i32, %arg1: i32) -> (i32, i32, i32, i32) {
    %c0_i32 = arith.constant 0 : i32
    %c0_i32_0 = arith.constant 0 : i32
    %c0_i32_1 = arith.constant 0 : i32
    return %arg0, %arg1, %c0_i32, %c0_i32_0 : i32, i32, i32, i32
  }
}

</mosaic_0001>

<bundles_post_ra>
// kernel: tpu_custom_call.1
= control target key start
LH: loop header
LB: loop body
LE: loop exit
PB: predicated region body
PF: predicated region fallthrough
CT: control target
= control target key end

     0   :  { %7 = vsyncpa [#allocation4], 0  ;;  %s1324_s0 = inlined_call_operand.vmem [shape: f32[2,2,4,14,128], index: 0, kind: input, shape index: {}]   ;;  %s1325_s1 = inlined_call_operand.hbm [shape: f32[14,128,128], index: 1, kind: input, shape index: {}]   ;;  %s1326_s2 = inlined_call_operand.hbm [shape: f32[2,2,8,128], index: 2, kind: output, shape index: {}]  }
   0x1   :  { %8 = vsyncpa [#allocation5], 0 }
   0x2   :  { %10 = vsyncpa [#allocation5 + $0x1], 0  ;;  %s1150_s9 = smov 0   ;;  %s1152_s10 = smov 0  }
   0x3   :  { %s1154_s11 = smov 0   ;;  %s1156_s12 = smov 0  }
   0x4   :  { %s1158_s13 = smov 0   ;;  %s1160_s14 = smov 0  }
   0x5   :  { %s1162_s15 = smov 0   ;;  %s1164_s16 = smov 0  }
   0x6 LB: > { %s891_s17 = sadd.s32 4294967295, %s1130_s16   ;;  %s892_s18 = sadd.s32 4294967294, %s1130_s16   ;;  %s1130_s16 = sphi %s1164_s16, %s16_s16   ;;  %s1126_s15 = sphi %s1162_s15, %s1337_s15   ;;  %s1122_s14 = sphi %s1160_s14, %s1336_s14   ;;  %s1118_s13 = sphi %s1158_s13, %s1335_s13   ;;  %s1114_s12 = sphi %s1156_s12, %s1334_s12   ;;  %s1110_s11 = sphi %s1154_s11, %s1333_s11   ;;  %s1106_s10 = sphi %s1152_s10, %s1332_s10   ;;  %s1102_s9 = sphi %s1150_s9, %s1331_s9  }
   0x7   : > { %s25_s19 = sadd.s32 1, %s1122_s14  ;;  %s28_s20 = sadd.s32 1, %s1126_s15 }
   0x8   : > { %p26_p0 = scmp.ge.s32.totalorder %s25_s19, 2  ;;  %s86_s21 = sadd.s32 1, %s1110_s11 }
   0x9   : > { %p96_p1 = scmp.ne.s32.totalorder %s1110_s11, %s1106_s10  ;;  %p97_p2 = scmp.eq.s32.totalorder %s891_s17, 3 }
   0xa   : > { %s1339_s19 = smov (%p26_p0, %s25_s19), 0  ;;  %s1341_s20 = smov (!%p26_p0, %s28_s20), %s1126_s15 }
   0xb   : > { %s82_s22 = ssub.s32 %s1122_s14, %s1339_s19  ;;  %p1202_p3 = por %p97_p2, %p96_p1 }
   0xc   : > { %p30_p4 = scmp.ge.s32.totalorder %s1341_s20, 2  ;;  %p102_p5 = scmp.ne.s32.totalorder %s1106_s10, %s1102_s9 }
   0xd   : > { %p103_p6 = scmp.eq.s32.totalorder %s892_s18, 3  ;;  %p893_p7 = scmp.ge.s32.totalorder %s1130_s16, 1 }
   0xe   : > { %s1343_s20 = smov (%p30_p4, %s1341_s20), 0  ;;  %p110_p9 = scmp.lt.s32.totalorder %s1130_s16, 5 }
   0xf   : > { %p1211_p8 = por %p103_p6, %p102_p5  ;;  %s81_s25 = ssub.s32 %s1126_s15, %s1343_s20 }
  0x10   : > { %s83_s26 = sor.u32 %s82_s22, %s81_s25  ;;  %p1218_p10 = pnand %p893_p7, %p110_p9 }
  0x11   : > { %p84_p11 = scmp.eq.s32.totalorder %s83_s26, 0  ;;  %p1222_p12 = scmp.eq.s32.totalorder %s891_s17, 0 }
  0x12   : > { %p920_p13 = pneg %p1218_p10  ;;  %s121_s3 = sshll.u32 %s1325_s1, 4  ;;  %s122_s3 = int_to_ptr.hbm [resolvable:$true] %s121_s3 }
  0x13   : > { %s1232_s4 = scalar_select %p84_p11, %s1110_s11, %s86_s21  }
  0x14   : > { %s1132_s5 = smov [#allocation3]   ;;  %p921_p0 = pnand %p1222_p12, %p920_p13 }
  0x15   : > { %s123_s6 = sshll.u32 %s1132_s5, 4  ;;  %s1133_s7 = smov 128   ;;  %s124_s6 = int_to_ptr.vmem [resolvable:$true] %s123_s6 }
  0x16   : > { %s1134_s8 = smov 8   ;;  %151 = sbr.rel (%p1218_p10) target bundleno = 323 (0x143), region = 28 }
  0x17   : > { %923 = dma.hbm_to_vmem [thread:$0]  (!%p921_p0), %s122_s3, 28672, %s124_s6, [#allocation4], %s1133_s7, %s1133_s7, %s1134_s8  }
  0x1b   : > { %1093 = dma.done.wait (%p1222_p12), [#allocation4], 28672  }
  0x1c   : > { %1095 = vsyncadd (%p1222_p12), [#allocation4], 4294938624  ;;  %v251_v0 = vld [vmem:[#allocation3 + $0xf8] sm:$0xff]  ;;  %v250_v2 = vld [vmem:[#allocation3 + $0xf0] sm:$0xff]  ;;  %p178_p1 = scmp.lt.s32.totalorder %s1118_s13, 1  ;;  %p180_p2 = scmp.lt.s32.totalorder %s1114_s12, 1 }
  0x1d   : > { %v309_v1 = vld [vmem:[#allocation3 + $0x178] sm:$0xff]  ;;  %252 = vmatpush.msra.mxu0 %v251_v0  ;;  %v308_v4 = vld [vmem:[#allocation3 + $0x170] sm:$0xff]  ;;  %v249_v6 = vld [vmem:[#allocation3 + $0xe8] sm:$0xff]  ;;  %s910_s30 = sshll.u32 %s1118_s13, 1  ;;  %s175_s3 = sand.u32 1, %s1106_s10  }
  0x1e   : > { %310 = vmatpush.msra.mxu2 %v309_v1  ;;  %v233_v3 = vld [vmem:[#allocation3 + $0x78] sm:$0xff]  ;;  %v232_v7 = vld [vmem:[#allocation3 + $0x70] sm:$0xff]  ;;  %v307_v8 = vld [vmem:[#allocation3 + $0x168] sm:$0xff]  ;;  %s1247_s17 = scalar_select %p178_p1, %s1118_s13, 1 }
  0x1f   : > { %v348_v5 = vld [vmem:[#allocation3 + $0x1f8] sm:$0xff]  ;;  %272 = vmatpush.msra.mxu1 %v233_v3  ;;  %253 = vmatpush.msra.mxu0 %v250_v2  ;;  %v347_v9 = vld [vmem:[#allocation3 + $0x1f0] sm:$0xff]  ;;  %v231_v10 = vld [vmem:[#allocation3 + $0x68] sm:$0xff]  ;;  %s1252_s18 = scalar_select %p180_p2, %s1114_s12, 1 }
  0x20   : > { %349 = vmatpush.msra.mxu3 %v348_v5  ;;  %311 = vmatpush.msra.mxu2 %v308_v4  ;;  %v248_v11 = vld [vmem:[#allocation3 + $0xe0] sm:$0xff]  ;;  %v346_v13 = vld [vmem:[#allocation3 + $0x1e8] sm:$0xff]  ;;  %v247_v16 = vld [vmem:[#allocation3 + $0xd8] sm:$0xff]  ;;  %s900_s22 = sshll.u32 %s1247_s17, 4  ;;  %s791_s5 = sadd.s32 %s1114_s12, %s910_s30 }
  0x21   : > { %273 = vmatpush.msra.mxu1 %v232_v7  ;;  %v306_v12 = vld [vmem:[#allocation3 + $0x160] sm:$0xff]  ;;  %254 = vmatpush.msra.mxu0 %v249_v6  ;;  %v305_v17 = vld [vmem:[#allocation3 + $0x158] sm:$0xff]  ;;  %v246_v20 = vld [vmem:[#allocation3 + $0xd0] sm:$0xff]  ;;  %s899_s21 = sshll.u32 %s1252_s18, 3  ;;  %s898_s6 = sshll.u32 %s175_s3, 3 }
  0x22   : > { %350 = vmatpush.msra.mxu3 %v347_v9  ;;  %312 = vmatpush.msra.mxu2 %v307_v8  ;;  %v230_v14 = vld [vmem:[#allocation3 + $0x60] sm:$0xff]  ;;  %v229_v18 = vld [vmem:[#allocation3 + $0x58] sm:$0xff]  ;;  %v304_v21 = vld [vmem:[#allocation3 + $0x150] sm:$0xff]  ;;  %s1256_s25 = sadd.s32 %s900_s22, %s899_s21  ;;  %s911_s7 = sshll.u32 %s791_s5, 3 }
  0x23   : > { %v345_v15 = vld [vmem:[#allocation3 + $0x1e0] sm:$0xff]  ;;  %274 = vmatpush.msra.mxu1 %v231_v10  ;;  %255 = vmatpush.msra.mxu0 %v248_v11  ;;  %v344_v19 = vld [vmem:[#allocation3 + $0x1d8] sm:$0xff]  ;;  %v228_v22 = vld [vmem:[#allocation3 + $0x50] sm:$0xff]  ;;  %s901_s26 = sshll.u32 %s1256_s25, 3  ;;  %s793_s18 = scalar_lea.hbm %s1326_s2, %s911_s7 }
  0x24   : > { %351 = vmatpush.msra.mxu3 %v346_v13  ;;  %313 = vmatpush.msra.mxu2 %v306_v12  ;;  %v343_v23 = vld [vmem:[#allocation3 + $0x1d0] sm:$0xff]  ;;  %v245_v24 = vld [vmem:[#allocation3 + $0xc8] sm:$0xff]  ;;  %v244_v28 = vld [vmem:[#allocation3 + $0xc0] sm:$0xff]  ;;  %s1262_s29 = scalar_lea.vmem %s1324_s0, %s901_s26  ;;  %s177_s21 = scalar_lea.vmem [#allocation6], %s898_s6 }
  0x25   : > { %275 = vmatpush.msra.mxu1 %v230_v14  ;;  %256 = vmatpush.msra.mxu0 %v247_v16  ;;  %v303_v25 = vld [vmem:[#allocation3 + $0x148] sm:$0xff]  ;;  %v302_v29 = vld [vmem:[#allocation3 + $0x140] sm:$0xff]  ;;  %v243_v32 = vld [vmem:[#allocation3 + $0xb8] sm:$0xff]  ;;  %s795_s22 = sshll.u32 %s177_s21, 4  ;;  %s797_s25 = sshll.u32 %s793_s18, 4  ;;  %s796_s22 = int_to_ptr.vmem [resolvable:$true] %s795_s22  ;;  %s798_s25 = int_to_ptr.hbm [resolvable:$true] %s797_s25 }
  0x26   : > { %352 = vmatpush.msra.mxu3 %v345_v15  ;;  %314 = vmatpush.msra.mxu2 %v305_v17  ;;  %v227_v26 = vld [vmem:[#allocation3 + $0x48] sm:$0xff]  ;;  %v226_v30 = vld [vmem:[#allocation3 + $0x40] sm:$0xff]  ;;  %v301_v33 = vld [vmem:[#allocation3 + $0x138] sm:$0xff]  ;;  %s781_s12 = scalar_lea.sflag [#allocation5], %s175_s3  ;;  %s1046_s13 = sshra.s32 %s798_s25, 4  ;;  %s1047_s13 = int_to_ptr.hbm [resolvable:$true] %s1046_s13 }
  0x27   : > { %276 = vmatpush.msra.mxu1 %v229_v18  ;;  %257 = vmatpush.msra.mxu0 %v246_v20  ;;  %v342_v27 = vld [vmem:[#allocation3 + $0x1c8] sm:$0xff]  ;;  %v341_v31 = vld [vmem:[#allocation3 + $0x1c0] sm:$0xff]  ;;  %v225_v34 = vld [vmem:[#allocation3 + $0x38] sm:$0xff]  ;;  %s1048_s26 = scalar_lea.hbm %s1047_s13, 8  ;;  %p1053_p7 = scmp.lt.s32.totalorder %s1047_s13, %s1326_s2 }
  0x28   : > { %353 = vmatpush.msra.mxu3 %v344_v19  ;;  %315 = vmatpush.msra.mxu2 %v304_v21  ;;  %v340_v35 = vld [vmem:[#allocation3 + $0x1b8] sm:$0xff]  ;;  %v242_v36 = vld [vmem:[#allocation3 + $0xb0] sm:$0xff]  ;;  %v241_v40 = vld [vmem:[#allocation3 + $0xa8] sm:$0xff]  ;;  %p1049_p4 = scmp.ne.s32.totalorder %s1047_s13, %s1048_s26 }
  0x29   : > { %277 = vmatpush.msra.mxu1 %v228_v22  ;;  %258 = vmatpush.msra.mxu0 %v245_v24  ;;  %v300_v37 = vld [vmem:[#allocation3 + $0x130] sm:$0xff]  ;;  %v299_v41 = vld [vmem:[#allocation3 + $0x128] sm:$0xff]  ;;  %v240_v44 = vld [vmem:[#allocation3 + $0xa0] sm:$0xff] }
  0x2a   : > { %354 = vmatpush.msra.mxu3 %v343_v23  ;;  %316 = vmatpush.msra.mxu2 %v303_v25  ;;  %v224_v38 = vld [vmem:[#allocation3 + $0x30] sm:$0xff]  ;;  %v223_v42 = vld [vmem:[#allocation3 + $0x28] sm:$0xff]  ;;  %v298_v45 = vld [vmem:[#allocation3 + $0x120] sm:$0xff]  ;;  %p1050_p5 = pnand %p1049_p4, %p1202_p3 }
  0x2b   : > { %278 = vmatpush.msra.mxu1 %v227_v26  ;;  %259 = vmatpush.msra.mxu0 %v244_v28  ;;  %v339_v39 = vld [vmem:[#allocation3 + $0x1b0] sm:$0xff]  ;;  %v338_v43 = vld [vmem:[#allocation3 + $0x1a8] sm:$0xff]  ;;  %v222_v46 = vld [vmem:[#allocation3 + $0x20] sm:$0xff] }
  0x2c   : > { %355 = vmatpush.msra.mxu3 %v342_v27  ;;  %317 = vmatpush.msra.mxu2 %v302_v29  ;;  %v337_v47 = vld [vmem:[#allocation3 + $0x1a0] sm:$0xff]  ;;  %v239_v48 = vld [vmem:[#allocation3 + $0x98] sm:$0xff]  ;;  %v238_v52 = vld [vmem:[#allocation3 + $0x90] sm:$0xff]  ;;  %p1051_p6 = pneg %p1050_p5 }
  0x2d   : > { %279 = vmatpush.msra.mxu1 %v226_v30  ;;  %260 = vmatpush.msra.mxu0 %v243_v32  ;;  %v297_v49 = vld [vmem:[#allocation3 + $0x118] sm:$0xff]  ;;  %v296_v53 = vld [vmem:[#allocation3 + $0x110] sm:$0xff]  ;;  %v237_v56 = vld [vmem:[#allocation3 + $0x88] sm:$0xff] }
  0x2e   : > { %356 = vmatpush.msra.mxu3 %v341_v31  ;;  %318 = vmatpush.msra.mxu2 %v301_v33  ;;  %v221_v50 = vld [vmem:[#allocation3 + $0x18] sm:$0xff]  ;;  %v220_v54 = vld [vmem:[#allocation3 + $0x10] sm:$0xff]  ;;  %v295_v57 = vld [vmem:[#allocation3 + $0x108] sm:$0xff] }
  0x2f   : > { %280 = vmatpush.msra.mxu1 %v225_v34  ;;  %261 = vmatpush.msra.mxu0 %v242_v36  ;;  %v336_v51 = vld [vmem:[#allocation3 + $0x198] sm:$0xff]  ;;  %v335_v55 = vld [vmem:[#allocation3 + $0x190] sm:$0xff]  ;;  %v219_v58 = vld [vmem:[#allocation3 + $0x8] sm:$0xff] }
  0x30   : > { %357 = vmatpush.msra.mxu3 %v340_v35  ;;  %319 = vmatpush.msra.mxu2 %v300_v37  ;;  %v334_v59 = vld [vmem:[#allocation3 + $0x188] sm:$0xff]  ;;  %v236_v60 = vld [vmem:[#allocation3 + $0x80] sm:$0xff]  ;;  %v387_v62 = vld [vmem:[#allocation3 + $0x278] sm:$0xff] }
  0x31   : > { %281 = vmatpush.msra.mxu1 %v224_v38  ;;  %262 = vmatpush.msra.mxu0 %v241_v40  ;;  %v294_v61 = vld [vmem:[#allocation3 + $0x100] sm:$0xff]  ;;  %v465_v63 = vld [vmem:[#allocation3 + $0x378] sm:$0xff]  ;;  %v386_v2 = vld [vmem:[#allocation3 + $0x270] sm:$0xff] }
  0x32   : > { %358 = vmatpush.msra.mxu3 %v339_v39  ;;  %320 = vmatpush.msra.mxu2 %v299_v41  ;;  %v218_v0 = vld [vmem:[#allocation3] sm:$0xff]  ;;  %v426_v3 = vld [vmem:[#allocation3 + $0x2f8] sm:$0xff]  ;;  %v464_v4 = vld [vmem:[#allocation3 + $0x370] sm:$0xff] }
  0x33   : > { %282 = vmatpush.msra.mxu1 %v223_v42  ;;  %263 = vmatpush.msra.mxu0 %v240_v44  ;;  %v333_v1 = vld [vmem:[#allocation3 + $0x180] sm:$0xff]  ;;  %v504_v5 = vld [vmem:[#allocation3 + $0x3f8] sm:$0xff]  ;;  %v385_v6 = vld [vmem:[#allocation3 + $0x268] sm:$0xff] }
  0x34   : > { %359 = vmatpush.msra.mxu3 %v338_v43  ;;  %321 = vmatpush.msra.mxu2 %v298_v45  ;;  %v425_v7 = vld [vmem:[#allocation3 + $0x2f0] sm:$0xff]  ;;  %v463_v8 = vld [vmem:[#allocation3 + $0x368] sm:$0xff]  ;;  %v384_v10 = vld [vmem:[#allocation3 + $0x260] sm:$0xff] }
  0x35   : > { %283 = vmatpush.msra.mxu1 %v222_v46  ;;  %264 = vmatpush.msra.mxu0 %v239_v48  ;;  %v503_v9 = vld [vmem:[#allocation3 + $0x3f0] sm:$0xff]  ;;  %v424_v11 = vld [vmem:[#allocation3 + $0x2e8] sm:$0xff]  ;;  %v462_v12 = vld [vmem:[#allocation3 + $0x360] sm:$0xff] }
  0x36   : > { %360 = vmatpush.msra.mxu3 %v337_v47  ;;  %322 = vmatpush.msra.mxu2 %v297_v49  ;;  %v502_v13 = vld [vmem:[#allocation3 + $0x3e8] sm:$0xff]  ;;  %v383_v14 = vld [vmem:[#allocation3 + $0x258] sm:$0xff]  ;;  %v423_v15 = vld [vmem:[#allocation3 + $0x2e0] sm:$0xff] }
  0x37   : > { %284 = vmatpush.msra.mxu1 %v221_v50  ;;  %265 = vmatpush.msra.mxu0 %v238_v52  ;;  %v461_v16 = vld [vmem:[#allocation3 + $0x358] sm:$0xff]  ;;  %v501_v17 = vld [vmem:[#allocation3 + $0x3e0] sm:$0xff]  ;;  %v382_v18 = vld [vmem:[#allocation3 + $0x250] sm:$0xff] }
  0x38   : > { %361 = vmatpush.msra.mxu3 %v336_v51  ;;  %323 = vmatpush.msra.mxu2 %v296_v53  ;;  %v422_v19 = vld [vmem:[#allocation3 + $0x2d8] sm:$0xff]  ;;  %v460_v20 = vld [vmem:[#allocation3 + $0x350] sm:$0xff]  ;;  %v381_v22 = vld [vmem:[#allocation3 + $0x248] sm:$0xff] }
  0x39   : > { %285 = vmatpush.msra.mxu1 %v220_v54  ;;  %266 = vmatpush.msra.mxu0 %v237_v56  ;;  %v500_v21 = vld [vmem:[#allocation3 + $0x3d8] sm:$0xff]  ;;  %v187_v23 = vld [vmem:[%s1262_s29] sm:$0xff]  ;;  %v188_v24 = vld [vmem:[%s1262_s29 + $0x8] sm:$0x3f] }
  0x3a   : > { %362 = vmatpush.msra.mxu3 %v335_v55  ;;  %324 = vmatpush.msra.mxu2 %v295_v57  ;;  %v902_v25 = vld [vmem:[%s1262_s29 + $0x10] sm:$0xff]  ;;  %v903_v26 = vld [vmem:[%s1262_s29 + $0x18] sm:$0x3f]  ;;  %v904_v27 = vld [vmem:[%s1262_s29 + $0x20] sm:$0xff] }
  0x3b   : > { %286 = vmatpush.msra.mxu1 %v219_v58  ;;  %267 = vmatpush.msra.mxu0 %v236_v60  ;;  %v421_v28 = vld [vmem:[#allocation3 + $0x2d0] sm:$0xff]  ;;  %v459_v29 = vld [vmem:[#allocation3 + $0x348] sm:$0xff]  ;;  %v192_v30 = vadd.f32 %v902_v25, %v187_v23  ;;  %v193_v31 = vadd.f32 %v903_v26, %v188_v24  ;;  %v195_v32 = vmax.f32 %v188_v24, %v903_v26  ;;  %v907_v36 = vld [vmem:[%s1262_s29 + $0x38] sm:$0x3f] }
  0x3c   : > { %363 = vmatpush.msra.mxu3 %v334_v59  ;;  %325 = vmatpush.msra.mxu2 %v294_v61  ;;  %v905_v33 = vld [vmem:[%s1262_s29 + $0x28] sm:$0x3f]  ;;  %v499_v34 = vld [vmem:[#allocation3 + $0x3d0] sm:$0xff]  ;;  %v194_v37 = vmax.f32 %v187_v23, %v902_v25  ;;  %v380_v38 = vld [vmem:[#allocation3 + $0x240] sm:$0xff] }
  0x3d   : > { %388 = vmatpush.msrb.mxu0 %v387_v62  ;;  %287 = vmatpush.msra.mxu1 %v218_v0  ;;  %v906_v35 = vld [vmem:[%s1262_s29 + $0x30] sm:$0xff]  ;;  %v420_v39 = vld [vmem:[#allocation3 + $0x2c8] sm:$0xff]  ;;  %v199_v40 = vadd.f32 %v904_v27, %v192_v30  ;;  %v200_v41 = vadd.f32 %v905_v33, %v193_v31  ;;  %v202_v42 = vmax.f32 %v195_v32, %v905_v33  ;;  %v458_v43 = vld [vmem:[#allocation3 + $0x340] sm:$0xff]  ;;  %s1052_s29 = scalar_lea.hbm %s1326_s2, 32 }
  0x3e   : > { %466 = vmatpush.msrb.mxu2 %v465_v63  ;;  %364 = vmatpush.msra.mxu3 %v333_v1  ;;  %v498_v44 = vld [vmem:[#allocation3 + $0x3c8] sm:$0xff]  ;;  %v201_v45 = vmax.f32 %v194_v37, %v904_v27  ;;  %v379_v46 = vld [vmem:[#allocation3 + $0x238] sm:$0xff]  ;;  %v419_v47 = vld [vmem:[#allocation3 + $0x2c0] sm:$0xff]  ;;  %p1054_p9 = scmp.lt.s32.totalorder %s1052_s29, %s1048_s26 }
  0x3f   : > { %389 = vmatpush.msrb.mxu0 %v386_v2  ;;  %427 = vmatpush.msrb.mxu1 %v426_v3  ;;  %v206_v48 = vadd.f32 %v906_v35, %v199_v40  ;;  %v207_v49 = vadd.f32 %v907_v36, %v200_v41  ;;  %v209_v50 = vmax.f32 %v202_v42, %v907_v36  ;;  %v457_v51 = vld [vmem:[#allocation3 + $0x338] sm:$0xff]  ;;  %v497_v52 = vld [vmem:[#allocation3 + $0x3c0] sm:$0xff]  ;;  %v378_v54 = vld [vmem:[#allocation3 + $0x230] sm:$0xff] }
  0x40   : > { %467 = vmatpush.msrb.mxu2 %v464_v4  ;;  %505 = vmatpush.msrb.mxu3 %v504_v5  ;;  %v1272_v53 = vmax.f32 %v201_v45, %v906_v35  ;;  %v418_v55 = vld [vmem:[#allocation3 + $0x2b8] sm:$0xff]  ;;  %v456_v58 = vld [vmem:[#allocation3 + $0x330] sm:$0xff]  ;;  %v377_v60 = vld [vmem:[#allocation3 + $0x228] sm:$0xff]  ;;  %p1055_p10 = por %p1054_p9, %p1053_p7 }
  0x41   : > { %390 = vmatpush.msrb.mxu0 %v385_v6  ;;  %428 = vmatpush.msrb.mxu1 %v425_v7  ;;  %v1274_v56 = vmul.f32 0.25, %v206_v48  ;;  %v211_v57 = vmul.f32 0.25, %v207_v49  ;;  %216 = vst [vmem:[#allocation2 + $0x18] sm:$0x3f] %v209_v50  ;;  %v496_v59 = vld [vmem:[#allocation3 + $0x3b8] sm:$0xff]  ;;  %v417_v61 = vld [vmem:[#allocation3 + $0x2b0] sm:$0xff] }
  0x42   : > { %468 = vmatpush.msrb.mxu2 %v463_v8  ;;  %506 = vmatpush.msrb.mxu3 %v503_v9  ;;  %215 = vst [vmem:[#allocation2 + $0x10] sm:$0xff] %v1272_v53  ;;  %v455_v62 = vld [vmem:[#allocation3 + $0x328] sm:$0xff]  ;;  %v495_v63 = vld [vmem:[#allocation3 + $0x3b0] sm:$0xff]  ;;  %v376_v0 = vld [vmem:[#allocation3 + $0x220] sm:$0xff]  ;;  %p1056_p11 = pnand %p1055_p10, %p1051_p6 }
  0x43   : > { %391 = vmatpush.msrb.mxu0 %v384_v10  ;;  %429 = vmatpush.msrb.mxu1 %v424_v11  ;;  %212 = vst [vmem:[#allocation2] sm:$0xff] %v1274_v56  ;;  %v416_v1 = vld [vmem:[#allocation3 + $0x2a8] sm:$0xff]  ;;  %v454_v2 = vld [vmem:[#allocation3 + $0x320] sm:$0xff]  ;;  %v375_v4 = vld [vmem:[#allocation3 + $0x218] sm:$0xff] }
  0x44   : > { %469 = vmatpush.msrb.mxu2 %v462_v12  ;;  %507 = vmatpush.msrb.mxu3 %v502_v13  ;;  %213 = vst [vmem:[#allocation2 + $0x8] sm:$0x3f] %v211_v57  ;;  %v494_v3 = vld [vmem:[#allocation3 + $0x3a8] sm:$0xff]  ;;  %v415_v5 = vld [vmem:[#allocation3 + $0x2a0] sm:$0xff]  ;;  %v453_v6 = vld [vmem:[#allocation3 + $0x318] sm:$0xff] }
  0x45   : > { %392 = vmatpush.msrb.mxu0 %v383_v14  ;;  %430 = vmatpush.msrb.mxu1 %v423_v15  ;;  %v493_v7 = vld [vmem:[#allocation3 + $0x3a0] sm:$0xff]  ;;  %v374_v8 = vld [vmem:[#allocation3 + $0x210] sm:$0xff]  ;;  %v414_v9 = vld [vmem:[#allocation3 + $0x298] sm:$0xff] }
  0x46   : > { %470 = vmatpush.msrb.mxu2 %v461_v16  ;;  %508 = vmatpush.msrb.mxu3 %v501_v17  ;;  %v452_v10 = vld [vmem:[#allocation3 + $0x310] sm:$0xff]  ;;  %v492_v11 = vld [vmem:[#allocation3 + $0x398] sm:$0xff]  ;;  %v373_v13 = vld [vmem:[#allocation3 + $0x208] sm:$0xff] }
  0x47   : > { %393 = vmatpush.msrb.mxu0 %v382_v18  ;;  %431 = vmatpush.msrb.mxu1 %v422_v19  ;;  %v413_v14 = vld [vmem:[#allocation3 + $0x290] sm:$0xff]  ;;  %v451_v15 = vld [vmem:[#allocation3 + $0x308] sm:$0xff]  ;;  %v372_v19 = vld [vmem:[#allocation3 + $0x200] sm:$0xff] }
  0x48   : > { %471 = vmatpush.msrb.mxu2 %v460_v20  ;;  %509 = vmatpush.msrb.mxu3 %v500_v21  ;;  %v491_v16 = vld [vmem:[#allocation3 + $0x390] sm:$0xff]  ;;  %v412_v20 = vld [vmem:[#allocation3 + $0x288] sm:$0xff]  ;;  %v450_v21 = vld [vmem:[#allocation3 + $0x300] sm:$0xff] }
  0x49   : > { %394 = vmatpush.msrb.mxu0 %v381_v22  ;;  %432 = vmatpush.msrb.mxu1 %v421_v28  ;;  %v490_v22 = vld [vmem:[#allocation3 + $0x388] sm:$0xff]  ;;  %v543_v23 = vld [vmem:[#allocation3 + $0x478] sm:$0xff]  ;;  %v411_v25 = vld [vmem:[#allocation3 + $0x280] sm:$0xff] }
  0x4a   : > { %472 = vmatpush.msrb.mxu2 %v459_v29  ;;  %510 = vmatpush.msrb.mxu3 %v499_v34  ;;  %v621_v24 = vld [vmem:[#allocation3 + $0x578] sm:$0xff]  ;;  %v489_v26 = vld [vmem:[#allocation3 + $0x380] sm:$0xff]  ;;  %v542_v27 = vld [vmem:[#allocation3 + $0x470] sm:$0xff] }
  0x4b   : > { %395 = vmatpush.msrb.mxu0 %v380_v38  ;;  %433 = vmatpush.msrb.mxu1 %v420_v39  ;;  %v292_v12 = vld [vmem:[#allocation2 + $0x2] sm:$0xff]  ;;  %v582_v28 = vld [vmem:[#allocation3 + $0x4f8] sm:$0xff]  ;;  %v620_v29 = vld [vmem:[#allocation3 + $0x570] sm:$0xff] }
  0x4c   : > { %473 = vmatpush.msrb.mxu2 %v458_v43  ;;  %511 = vmatpush.msrb.mxu3 %v498_v44  ;;  %v234_v17 = vld [vmem:[#allocation2 + $0x1] sm:$0xff]  ;;  %v660_v30 = vld [vmem:[#allocation3 + $0x5f8] sm:$0xff]  ;;  %v581_v33 = vld [vmem:[#allocation3 + $0x4f0] sm:$0xff] }
  0x4d   : > { %396 = vmatpush.msrb.mxu0 %v379_v46  ;;  %434 = vmatpush.msrb.mxu1 %v419_v47  ;;  %v331_v18 = vld [vmem:[#allocation2 + $0x3] sm:$0xff]  ;;  %v659_v35 = vld [vmem:[#allocation3 + $0x5f0] sm:$0xff]  ;;  %v539_v42 = vld [vmem:[#allocation3 + $0x458] sm:$0xff] }
  0x4e   : > { %474 = vmatpush.msrb.mxu2 %v457_v51  ;;  %512 = vmatpush.msrb.mxu3 %v497_v52  ;;  %v448_v31 = vld [vmem:[#allocation2 + $0x6] sm:$0xff]  ;;  %v617_v44 = vld [vmem:[#allocation3 + $0x558] sm:$0xff]  ;;  %v538_v46 = vld [vmem:[#allocation3 + $0x450] sm:$0xff] }
  0x4f   : > { %397 = vmatpush.msrb.mxu0 %v378_v54  ;;  %435 = vmatpush.msrb.mxu1 %v418_v55  ;;  %v541_v32 = vld [vmem:[#allocation3 + $0x468] sm:$0xff]  ;;  %v540_v37 = vld [vmem:[#allocation3 + $0x460] sm:$0xff]  ;;  %v578_v47 = vld [vmem:[#allocation3 + $0x4d8] sm:$0xff] }
  0x50   : > { %475 = vmatpush.msrb.mxu2 %v456_v58  ;;  %513 = vmatpush.msrb.mxu3 %v496_v59  ;;  %v619_v34 = vld [vmem:[#allocation3 + $0x568] sm:$0xff]  ;;  %v618_v39 = vld [vmem:[#allocation3 + $0x560] sm:$0xff]  ;;  %v616_v48 = vld [vmem:[#allocation3 + $0x550] sm:$0xff] }
  0x51   : > { %398 = vmatpush.msrb.mxu0 %v377_v60  ;;  %436 = vmatpush.msrb.mxu1 %v417_v61  ;;  %v370_v36 = vld [vmem:[#allocation2 + $0x4] sm:$0xff]  ;;  %v656_v49 = vld [vmem:[#allocation3 + $0x5d8] sm:$0xff]  ;;  %v577_v51 = vld [vmem:[#allocation3 + $0x4d0] sm:$0xff] }
  0x52   : > { %476 = vmatpush.msrb.mxu2 %v455_v62  ;;  %514 = vmatpush.msrb.mxu3 %v495_v63  ;;  %v580_v38 = vld [vmem:[#allocation3 + $0x4e8] sm:$0xff]  ;;  %v579_v43 = vld [vmem:[#allocation3 + $0x4e0] sm:$0xff]  ;;  %v535_v58 = vld [vmem:[#allocation3 + $0x438] sm:$0xff] }
  0x53   : > { %399 = vmatpush.msrb.mxu0 %v376_v0  ;;  %437 = vmatpush.msrb.mxu1 %v416_v1  ;;  %v658_v40 = vld [vmem:[#allocation3 + $0x5e8] sm:$0xff]  ;;  %v657_v45 = vld [vmem:[#allocation3 + $0x5e0] sm:$0xff]  ;;  %v613_v60 = vld [vmem:[#allocation3 + $0x538] sm:$0xff] }
  0x54   : > { %477 = vmatpush.msrb.mxu2 %v454_v2  ;;  %515 = vmatpush.msrb.mxu3 %v494_v3  ;;  %v409_v41 = vld [vmem:[#allocation2 + $0x5] sm:$0xff]  ;;  %v534_v62 = vld [vmem:[#allocation3 + $0x430] sm:$0xff]  ;;  %v574_v63 = vld [vmem:[#allocation3 + $0x4b8] sm:$0xff] }
  0x55   : > { %400 = vmatpush.msrb.mxu0 %v375_v4  ;;  %438 = vmatpush.msrb.mxu1 %v415_v5  ;;  %v537_v50 = vld [vmem:[#allocation3 + $0x448] sm:$0xff]  ;;  %v536_v54 = vld [vmem:[#allocation3 + $0x440] sm:$0xff]  ;;  %v612_v0 = vld [vmem:[#allocation3 + $0x530] sm:$0xff] }
  0x56   : > { %478 = vmatpush.msrb.mxu2 %v453_v6  ;;  %516 = vmatpush.msrb.mxu3 %v493_v7  ;;  %v615_v52 = vld [vmem:[#allocation3 + $0x548] sm:$0xff]  ;;  %v575_v59 = vld [vmem:[#allocation3 + $0x4c0] sm:$0xff]  ;;  %v652_v1 = vld [vmem:[#allocation3 + $0x5b8] sm:$0xff] }
  0x57   : > { %401 = vmatpush.msrb.mxu0 %v374_v8  ;;  %439 = vmatpush.msrb.mxu1 %v414_v9  ;;  %v576_v55 = vld [vmem:[#allocation3 + $0x4c8] sm:$0xff]  ;;  %v653_v61 = vld [vmem:[#allocation3 + $0x5c0] sm:$0xff]  ;;  %v573_v3 = vld [vmem:[#allocation3 + $0x4b0] sm:$0xff] }
  0x58   : > { %479 = vmatpush.msrb.mxu2 %v452_v10  ;;  %517 = vmatpush.msrb.mxu3 %v492_v11  ;;  %v654_v57 = vld [vmem:[#allocation3 + $0x5c8] sm:$0xff]  ;;  %v651_v5 = vld [vmem:[#allocation3 + $0x5b0] sm:$0xff]  ;;  %v532_v6 = vld [vmem:[#allocation3 + $0x420] sm:$0xff] }
  0x59   : > { %326 = vmatmul.f32.vlgmr.msra.gmra.mxu2 %v292_v12  ;;  %402 = vmatpush.msrb.mxu0 %v373_v13  ;;  %v533_v2 = vld [vmem:[#allocation3 + $0x428] sm:$0xff]  ;;  %v610_v8 = vld [vmem:[#allocation3 + $0x520] sm:$0xff]  ;;  %v531_v10 = vld [vmem:[#allocation3 + $0x418] sm:$0xff] }
  0x5a   : > { %440 = vmatpush.msrb.mxu1 %v413_v14  ;;  %480 = vmatpush.msrb.mxu2 %v451_v15  ;;  %v611_v4 = vld [vmem:[#allocation3 + $0x528] sm:$0xff]  ;;  %v571_v11 = vld [vmem:[#allocation3 + $0x4a0] sm:$0xff]  ;;  %v609_v12 = vld [vmem:[#allocation3 + $0x518] sm:$0xff] }
  0x5b   : > { %518 = vmatpush.msrb.mxu3 %v491_v16  ;;  %268 = vmatmul.f32.vlgmr.msra.gmra.mxu0 %v234_v17  ;;  %v572_v7 = vld [vmem:[#allocation3 + $0x4a8] sm:$0xff]  ;;  %v649_v13 = vld [vmem:[#allocation3 + $0x5a0] sm:$0xff]  ;;  %v530_v14 = vld [vmem:[#allocation3 + $0x410] sm:$0xff] }
  0x5c   : > { %365 = vmatmul.f32.vlgmr.msra.gmra.mxu3 %v331_v18  ;;  %403 = vmatpush.msrb.mxu0 %v372_v19  ;;  %v650_v9 = vld [vmem:[#allocation3 + $0x5a8] sm:$0xff]  ;;  %v570_v15 = vld [vmem:[#allocation3 + $0x498] sm:$0xff]  ;;  %v608_v16 = vld [vmem:[#allocation3 + $0x510] sm:$0xff] }
  0x5d   : > { %441 = vmatpush.msrb.mxu1 %v412_v20  ;;  %481 = vmatpush.msrb.mxu2 %v450_v21  ;;  %v648_v17 = vld [vmem:[#allocation3 + $0x598] sm:$0xff]  ;;  %v529_v18 = vld [vmem:[#allocation3 + $0x408] sm:$0xff]  ;;  %v569_v19 = vld [vmem:[#allocation3 + $0x490] sm:$0xff] }
  0x5e   : > { %519 = vmatpush.msrb.mxu3 %v490_v22  ;;  %288 = vmatmul.f32.vlgmr.msra.gmra.mxu1 %v1274_v56  ;;  %v614_v56 = vld [vmem:[#allocation3 + $0x540] sm:$0xff]  ;;  %v607_v20 = vld [vmem:[#allocation3 + $0x508] sm:$0xff]  ;;  %v647_v21 = vld [vmem:[#allocation3 + $0x590] sm:$0xff] }
  0x5f   : > { %544 = vmatpush.msra.mxu0 %v543_v23  ;;  %622 = vmatpush.msra.mxu2 %v621_v24  ;;  %v528_v22 = vld [vmem:[#allocation3 + $0x400] sm:$0xff]  ;;  %v568_v23 = vld [vmem:[#allocation3 + $0x488] sm:$0xff] }
  0x60   : > { %442 = vmatpush.msrb.mxu1 %v411_v25  ;;  %520 = vmatpush.msrb.mxu3 %v489_v26  ;;  %v606_v24 = vld [vmem:[#allocation3 + $0x500] sm:$0xff]  ;;  %v646_v25 = vld [vmem:[#allocation3 + $0x588] sm:$0xff]  ;;  %v526_v26 = vld [vmem:[#allocation2 + $0x11] sm:$0xff] }
  0x61   : > { %545 = vmatpush.msra.mxu0 %v542_v27  ;;  %623 = vmatpush.msra.mxu2 %v620_v29  ;;  %v604_v27 = vld [vmem:[#allocation2 + $0x13] sm:$0xff]  ;;  %v567_v29 = vld [vmem:[#allocation3 + $0x480] sm:$0xff] }
  0x62   : > { %583 = vmatpush.msra.mxu1 %v582_v28  ;;  %661 = vmatpush.msra.mxu3 %v660_v30  ;;  %v699_v28 = vld [vmem:[#allocation3 + $0x678] sm:$0xff]  ;;  %v645_v30 = vld [vmem:[#allocation3 + $0x580] sm:$0xff] }
  0x63   : > { %482 = vmatmul.f32.vlgmr.msrb.gmra.mxu2 %v448_v31  ;;  %546 = vmatpush.msra.mxu0 %v541_v32  ;;  %v565_v31 = vld [vmem:[#allocation2 + $0x12] sm:$0xff] }
  0x64   : > { %584 = vmatpush.msra.mxu1 %v581_v33  ;;  %624 = vmatpush.msra.mxu2 %v619_v34  ;;  %v643_v32 = vld [vmem:[#allocation2 + $0x14] sm:$0xff] }
  0x65   : > { %662 = vmatpush.msra.mxu3 %v659_v35  ;;  %404 = vmatmul.f32.vlgmr.msrb.gmra.mxu0 %v370_v36  ;;  %v698_v33 = vld [vmem:[#allocation3 + $0x670] sm:$0xff]  ;;  %v738_v34 = vld [vmem:[#allocation3 + $0x6f8] sm:$0xff]  ;;  %v697_v35 = vld [vmem:[#allocation3 + $0x668] sm:$0xff] }
  0x66   : > { %521 = vmatmul.f32.vlgmr.msrb.gmra.mxu3 %v1272_v53  ;;  %547 = vmatpush.msra.mxu0 %v540_v37  ;;  %v655_v53 = vld [vmem:[#allocation3 + $0x5d0] sm:$0xff]  ;;  %v696_v37 = vld [vmem:[#allocation3 + $0x660] sm:$0xff] }
  0x67   : > { %585 = vmatpush.msra.mxu1 %v580_v38  ;;  %625 = vmatpush.msra.mxu2 %v618_v39  ;;  %v737_v36 = vld [vmem:[#allocation3 + $0x6f0] sm:$0xff]  ;;  %v736_v38 = vld [vmem:[#allocation3 + $0x6e8] sm:$0xff]  ;;  %v695_v39 = vld [vmem:[#allocation3 + $0x658] sm:$0xff] }
  0x68   : > { %663 = vmatpush.msra.mxu3 %v658_v40  ;;  %443 = vmatmul.f32.vlgmr.msrb.gmra.mxu1 %v409_v41  ;;  %v735_v40 = vld [vmem:[#allocation3 + $0x6e0] sm:$0xff]  ;;  %v694_v41 = vld [vmem:[#allocation3 + $0x650] sm:$0xff] }
  0x69   : > { %548 = vmatpush.msra.mxu0 %v539_v42  ;;  %586 = vmatpush.msra.mxu1 %v579_v43  ;;  %v734_v42 = vld [vmem:[#allocation3 + $0x6d8] sm:$0xff]  ;;  %v693_v43 = vld [vmem:[#allocation3 + $0x648] sm:$0xff] }
  0x6a   : > { %626 = vmatpush.msra.mxu2 %v617_v44  ;;  %664 = vmatpush.msra.mxu3 %v657_v45  ;;  %v733_v44 = vld [vmem:[#allocation3 + $0x6d0] sm:$0xff]  ;;  %v692_v45 = vld [vmem:[#allocation3 + $0x640] sm:$0xff] }
  0x6b   : > { %549 = vmatpush.msra.mxu0 %v538_v46  ;;  %587 = vmatpush.msra.mxu1 %v578_v47  ;;  %v732_v46 = vld [vmem:[#allocation3 + $0x6c8] sm:$0xff]  ;;  %v691_v47 = vld [vmem:[#allocation3 + $0x638] sm:$0xff] }
  0x6c   : > { %627 = vmatpush.msra.mxu2 %v616_v48  ;;  %665 = vmatpush.msra.mxu3 %v656_v49  ;;  %v731_v48 = vld [vmem:[#allocation3 + $0x6c0] sm:$0xff]  ;;  %v690_v49 = vld [vmem:[#allocation3 + $0x630] sm:$0xff] }
  0x6d   : > { %550 = vmatpush.msra.mxu0 %v537_v50  ;;  %588 = vmatpush.msra.mxu1 %v577_v51  ;;  %v730_v50 = vld [vmem:[#allocation3 + $0x6b8] sm:$0xff]  ;;  %v689_v51 = vld [vmem:[#allocation3 + $0x628] sm:$0xff] }
  0x6e   : > { %628 = vmatpush.msra.mxu2 %v615_v52  ;;  %666 = vmatpush.msra.mxu3 %v655_v53  ;;  %v729_v52 = vld [vmem:[#allocation3 + $0x6b0] sm:$0xff]  ;;  %v688_v53 = vld [vmem:[#allocation3 + $0x620] sm:$0xff] }
  0x6f   : > { %551 = vmatpush.msra.mxu0 %v536_v54  ;;  %589 = vmatpush.msra.mxu1 %v576_v55  ;;  %v728_v54 = vld [vmem:[#allocation3 + $0x6a8] sm:$0xff]  ;;  %v687_v55 = vld [vmem:[#allocation3 + $0x618] sm:$0xff] }
  0x70   : > { %629 = vmatpush.msra.mxu2 %v614_v56  ;;  %667 = vmatpush.msra.mxu3 %v654_v57  ;;  %v727_v56 = vld [vmem:[#allocation3 + $0x6a0] sm:$0xff]  ;;  %v686_v57 = vld [vmem:[#allocation3 + $0x610] sm:$0xff] }
  0x71   : > { %552 = vmatpush.msra.mxu0 %v535_v58  ;;  %590 = vmatpush.msra.mxu1 %v575_v59  ;;  %v726_v58 = vld [vmem:[#allocation3 + $0x698] sm:$0xff]  ;;  %v685_v59 = vld [vmem:[#allocation3 + $0x608] sm:$0xff] }
  0x72   : > { %630 = vmatpush.msra.mxu2 %v613_v60  ;;  %668 = vmatpush.msra.mxu3 %v653_v61  ;;  %v725_v60 = vld [vmem:[#allocation3 + $0x690] sm:$0xff]  ;;  %v684_v61 = vld [vmem:[#allocation3 + $0x600] sm:$0xff] }
  0x73   : > { %553 = vmatpush.msra.mxu0 %v534_v62  ;;  %591 = vmatpush.msra.mxu1 %v574_v63  ;;  %v724_v62 = vld [vmem:[#allocation3 + $0x688] sm:$0xff]  ;;  %v682_v63 = vld [vmem:[#allocation2 + $0x15] sm:$0xff] }
  0x74   : > { %631 = vmatpush.msra.mxu2 %v612_v0  ;;  %669 = vmatpush.msra.mxu3 %v652_v1  ;;  %v723_v0 = vld [vmem:[#allocation3 + $0x680] sm:$0xff]  ;;  %v721_v1 = vld [vmem:[#allocation2 + $0x16] sm:$0xff] }
  0x75   : > { %554 = vmatpush.msra.mxu0 %v533_v2  ;;  %592 = vmatpush.msra.mxu1 %v573_v3 }
  0x76   : > { %632 = vmatpush.msra.mxu2 %v611_v4  ;;  %670 = vmatpush.msra.mxu3 %v651_v5 }
  0x77   : > { %555 = vmatpush.msra.mxu0 %v532_v6  ;;  %593 = vmatpush.msra.mxu1 %v572_v7 }
  0x78   : > { %633 = vmatpush.msra.mxu2 %v610_v8  ;;  %671 = vmatpush.msra.mxu3 %v650_v9 }
  0x79   : > { %556 = vmatpush.msra.mxu0 %v531_v10  ;;  %594 = vmatpush.msra.mxu1 %v571_v11 }
  0x7a   : > { %634 = vmatpush.msra.mxu2 %v609_v12  ;;  %672 = vmatpush.msra.mxu3 %v649_v13 }
  0x7b   : > { %557 = vmatpush.msra.mxu0 %v530_v14  ;;  %595 = vmatpush.msra.mxu1 %v570_v15 }
  0x7c   : > { %635 = vmatpush.msra.mxu2 %v608_v16  ;;  %673 = vmatpush.msra.mxu3 %v648_v17 }
  0x7d   : > { %558 = vmatpush.msra.mxu0 %v529_v18  ;;  %596 = vmatpush.msra.mxu1 %v569_v19 }
  0x7e   : > { %636 = vmatpush.msra.mxu2 %v607_v20  ;;  %674 = vmatpush.msra.mxu3 %v647_v21 }
  0x7f   : > { %559 = vmatpush.msra.mxu0 %v528_v22  ;;  %597 = vmatpush.msra.mxu1 %v568_v23 }
  0x80   : > { %637 = vmatpush.msra.mxu2 %v606_v24  ;;  %675 = vmatpush.msra.mxu3 %v646_v25 }
  0x81   : > { %560 = vmatmul.f32.vlgmr.msra.gmra.mxu0 %v526_v26  ;;  %638 = vmatmul.f32.vlgmr.msra.gmra.mxu2 %v604_v27 }
  0x82   : > { %700 = vmatpush.msrb.mxu0 %v699_v28  ;;  %598 = vmatpush.msra.mxu1 %v567_v29 }
  0x83   : > { %676 = vmatpush.msra.mxu3 %v645_v30  ;;  %599 = vmatmul.f32.vlgmr.msra.gmra.mxu1 %v565_v31 }
  0x84   : > { %677 = vmatmul.f32.vlgmr.msra.gmra.mxu3 %v643_v32  ;;  %701 = vmatpush.msrb.mxu0 %v698_v33 }
  0x85   : > { %739 = vmatpush.msrb.mxu1 %v738_v34 }
  0x86   : > { %702 = vmatpush.msrb.mxu0 %v697_v35 }
  0x87   : > { %740 = vmatpush.msrb.mxu1 %v737_v36 }
  0x88   : > { %703 = vmatpush.msrb.mxu0 %v696_v37 }
  0x89   : > { %741 = vmatpush.msrb.mxu1 %v736_v38 }
  0x8a   : > { %704 = vmatpush.msrb.mxu0 %v695_v39 }
  0x8b   : > { %742 = vmatpush.msrb.mxu1 %v735_v40 }
  0x8c   : > { %705 = vmatpush.msrb.mxu0 %v694_v41 }
  0x8d   : > { %743 = vmatpush.msrb.mxu1 %v734_v42 }
  0x8e   : > { %706 = vmatpush.msrb.mxu0 %v693_v43 }
  0x8f   : > { %744 = vmatpush.msrb.mxu1 %v733_v44 }
  0x90   : > { %707 = vmatpush.msrb.mxu0 %v692_v45 }
  0x91   : > { %745 = vmatpush.msrb.mxu1 %v732_v46 }
  0x92   : > { %708 = vmatpush.msrb.mxu0 %v691_v47 }
  0x93   : > { %746 = vmatpush.msrb.mxu1 %v731_v48 }
  0x94   : > { %709 = vmatpush.msrb.mxu0 %v690_v49 }
  0x95   : > { %747 = vmatpush.msrb.mxu1 %v730_v50 }
  0x96   : > { %710 = vmatpush.msrb.mxu0 %v689_v51 }
  0x97   : > { %748 = vmatpush.msrb.mxu1 %v729_v52 }
  0x98   : > { %711 = vmatpush.msrb.mxu0 %v688_v53 }
  0x99   : > { %749 = vmatpush.msrb.mxu1 %v728_v54 }
  0x9a   : > { %712 = vmatpush.msrb.mxu0 %v687_v55 }
  0x9b   : > { %750 = vmatpush.msrb.mxu1 %v727_v56 }
  0x9c   : > { %713 = vmatpush.msrb.mxu0 %v686_v57 }
  0x9d   : > { %751 = vmatpush.msrb.mxu1 %v726_v58 }
  0x9e   : > { %714 = vmatpush.msrb.mxu0 %v685_v59 }
  0x9f   : > { %752 = vmatpush.msrb.mxu1 %v725_v60 }
  0xa0   : > { %715 = vmatpush.msrb.mxu0 %v684_v61 }
  0xa1   : > { %753 = vmatpush.msrb.mxu1 %v724_v62  ;;  %716 = vmatmul.f32.vlgmr.msrb.gmra.mxu0 %v682_v63 }
  0xa3   : > { %754 = vmatpush.msrb.mxu1 %v723_v0 }
  0xa4   : > { %755 = vmatmul.f32.vlgmr.msrb.gmra.mxu1 %v721_v1 }
  0xd8   : > { %v269_v3 = vpop.f32.mrf.mxu0 }
  0xdb   : > { %v289_v2 = vpop.f32.mrf.mxu1 }
  0xdc   : > { %v290_v4 = vadd.f32 %v289_v2, %v269_v3  ;;  %v327_v5 = vpop.f32.mrf.mxu2 }
  0xde   : > { %v330_v6 = vadd.f32 %v327_v5, %v290_v4 }
  0xdf   : > { %v366_v7 = vpop.f32.mrf.mxu3 }
  0xe0   : > { %v369_v8 = vadd.f32 %v366_v7, %v330_v6 }
  0xe2   : > { %v405_v9 = vpop.f32.mrf.mxu0 }
  0xe3   : > { %v408_v10 = vadd.f32 %v405_v9, %v369_v8 }
  0xe5   : > { %v444_v11 = vpop.f32.mrf.mxu1 }
  0xe6   : > { %v447_v12 = vadd.f32 %v444_v11, %v408_v10  ;;  %v483_v13 = vpop.f32.mrf.mxu2 }
  0xe8   : > { %v486_v14 = vadd.f32 %v483_v13, %v447_v12 }
  0xe9   : > { %v522_v15 = vpop.f32.mrf.mxu3 }
  0xea   : > { %v525_v17 = vadd.f32 %v522_v15, %v486_v14 }
  0xfe   : > { %v561_v16 = vpop.f32.mrf.mxu0 }
  0xff   : > { %v564_v18 = vadd.f32 %v561_v16, %v525_v17 }
 0x100   : > { %v600_v19 = vpop.f32.mrf.mxu1 }
 0x101   : > { %v603_v21 = vadd.f32 %v600_v19, %v564_v18 }
 0x104   : > { %v639_v20 = vpop.f32.mrf.mxu2 }
 0x105   : > { %v642_v22 = vadd.f32 %v639_v20, %v603_v21 }
 0x107   : > { %v678_v23 = vpop.f32.mrf.mxu3 }
 0x108   : > { %v681_v24 = vadd.f32 %v678_v23, %v642_v22 }
 0x11e   : > { %v717_v25 = vpop.f32.mrf.mxu0 }
 0x11f   : > { %v720_v26 = vadd.f32 %v717_v25, %v681_v24 }
 0x121   : > { %v756_v27 = vpop.f32.mrf.mxu1 }
 0x122   : > { %v759_v28 = vadd.f32 %v756_v27, %v720_v26 }
 0x124   : > { %v908_v29 = vmul.f32 -1.442695, %v759_v28 }
 0x126   : > { %998 = vpow2.f32 %v908_v29 }
 0x12c   : > { %v999_v30 = vpop.eup %998 }
 0x12d   : > { %v763_v31 = vadd.f32 1.0, %v999_v30 }
 0x12f   : > { %1000 = vrcp.f32 %v763_v31  ;;  %v775_v35 = vand.u32 2147483648, %v763_v31  ;;  %v773_v37 = vand.u32 2147483647, %v763_v31  ;;  %vm769_vm1 = vweird.f32 %v763_v31 }
 0x131   : > { %v776_v39 = vor.u32 1.1754944e-38, %v775_v35  ;;  %vm774_vm3 = vcmp.eq.f32.partialorder %v773_v37, 8.507059e+37 }
 0x135   : > { %v1001_v32 = vpop.eup %1000 }
 0x136   : > { %v765_v33 = vmul.f32 %v1001_v32, %v763_v31  ;;  %vm770_vm0 = vweird.f32 %v1001_v32 }
 0x137   : > { %vm771_vm2 = vmor %vm769_vm1, %vm770_vm0 }
 0x138   : > { %v766_v34 = vsub.f32 1.0, %v765_v33 }
 0x13a   : > { %v767_v36 = vmul.f32 %v1001_v32, %v766_v34 }
 0x13c   : > { %v768_v38 = vadd.f32 %v1001_v32, %v767_v36 }
 0x13e   : > { %v772_v40 = vsel %vm771_vm2, %v1001_v32, %v768_v38 }
 0x13f   : > { %v777_v41 = vsel %vm774_vm3, %v776_v39, %v772_v40 }
 0x140   : > { %779 = vst [vmem:[%s177_s21] sm:$0xff] %v777_v41 }
 0x141   : > { %1059 = shalt.err (!%p1056_p11)
}
 0x142   : > { %918 = dma.vmem_to_hbm [thread:$0]  (%p1202_p3), %s796_s22, 128, %s798_s25, %s781_s12  }
 0x143 PF: > { %p930_p12 = scmp.ge.s32.totalorder %s1130_s16, 2  ;;  %s809_s3 = sand.u32 1, %s1102_s9  }
 0x144   : > { %s810_s6 = scalar_lea.sflag [#allocation5], %s809_s3 }
 0x145   : > { %p925_p13 = pnand %p930_p12, %p1211_p8 }
 0x147   : > { %p926_p0 = pneg %p925_p13 }
 0x149   : > { %1097 = dma.done.wait (%p926_p0), %s810_s6, 128  }
 0x14a   : > { %1099 = vsyncadd (%p926_p0), %s810_s6, 4294967168  ;;  %s16_s16 = sadd.s32 1, %s1130_s16   ;;  %s1331_s9 = smov %s1106_s10 }
 0x14b   : > { %p13_p1 = scmp.ge.s32.totalorder %s16_s16, 6   ;;  %s1332_s10 = smov %s1110_s11 }
 0x14c   : > { %s1333_s11 = smov %s1232_s4  ;;  %s1334_s12 = smov %s1122_s14 }
 0x14d   : > { %s1335_s13 = smov %s1126_s15  ;;  %s1336_s14 = smov %s1339_s19 }
 0x14e   : > { %s1337_s15 = smov %s1343_s20  ;;  %15 = sbr.rel (!%p13_p1) target bundleno = 6 (0x6), region = 85 }
 0x153   :  { %816 = vsyncpa [#allocation4], 1 }
 0x154   :  { %818 = vsyncpa [#allocation4 + $0x1], 1 }
 0x155   :  { %819 = vsyncpa [#allocation5], 1 }
 0x156   :  { %821 = vsyncpa [#allocation5 + $0x1], 1 }

</bundles_post_ra>
